<compile_context>
chip_gen: v6e
topology: v6e:2x2x1
jax: 0.10.0
libtpu: 0.0.40
codegen_flags: <defaults>
</compile_context>

<pallas_src>
import jax
import jax.numpy as jnp
from jax import lax
from jax.experimental import pallas as pl
from jax.experimental.pallas import tpu as pltpu

EPS = 1e-5          # InstanceNorm2d default eps
NEG_SLOPE = 0.01    # nnU-Net default LeakyReLU negative slope
# config: conv_bias=False, dropout_op=None, norm_op=InstanceNorm2d(affine=True),
#         nonlin=LeakyReLU(0.01), nonlin_first=False


def _round_up(x, m):
    return (x + m - 1) // m * m


# ---------------- roll-direction probe (one-time, tiny) ----------------
_ROLL_SIGN = None


def _probe_roll_kernel(x_ref, o_ref):
    o_ref[...] = pltpu.roll(x_ref[...], 1, axis=1)


def _roll_shift_sign():
    """Return sign such that pltpu.roll(x, (sign*d) % n, axis)[..., s] == x[..., (s+d) % n]."""
    global _ROLL_SIGN
    if _ROLL_SIGN is None:
        x = lax.broadcasted_iota(jnp.int32, (8, 128), 1)
        r = pl.pallas_call(
            _probe_roll_kernel,
            out_shape=jax.ShapeDtypeStruct((8, 128), jnp.int32),
        )(x)
        # jnp.roll convention (out[i] = in[i - shift]) => out[..., 1] == 0
        _ROLL_SIGN = -1 if int(r[0, 1]) == 0 else 1
    return _ROLL_SIGN


# ---------------- fused stacked-conv kernel ----------------
def _make_kernel(cfgs, s, h, w, cout_last, roll_sign):
    """cfgs: tuple of (cin_real, cin_pad, cout_real, cout_pad, K=9*cin_pad) per block."""
    nb = len(cfgs)
    k_max = max(c[4] for c in cfgs)

    def kernel(*refs):
        x_ref = refs[0]
        w_refs = [refs[1 + 3 * i] for i in range(nb)]
        g_refs = [refs[2 + 3 * i] for i in range(nb)]
        b_refs = [refs[3 + 3 * i] for i in range(nb)]
        o_ref = refs[1 + 3 * nb]
        slab_ref = refs[2 + 3 * nb]

        # flat output-pixel index on the lane axis; used to zero taps that fall
        # outside the image (implements the conv's 'same' zero padding in-kernel).
        pos = lax.broadcasted_iota(jnp.int32, (1, s), 1)
        ow = (pos & (w - 1)) if (w & (w - 1)) == 0 else (pos % w)

        # 3x3 taps: lane shift + validity mask (identical for every block -> hoisted)
        taps = []
        for dh in (-1, 0, 1):
            for dw in (-1, 0, 1):
                d = dh * w + dw
                conds = []
                if dh < 0:
                    conds.append(pos >= (-dh) * w)
                if dh > 0:
                    conds.append(pos < (h - dh) * w)
                if dw < 0:
                    conds.append(ow >= -dw)
                if dw > 0:
                    conds.append(ow < w - dw)
                mask = None
                for c in conds:
                    mask = c if mask is None else (mask & c)
                taps.append((d, (roll_sign * d) % s, mask))

        a = x_ref[0].astype(jnp.float32)            # (Cin0, S), lane-dense

        for i, (_cin_r, cin_p, _cout_r, cout_p, kdim) in enumerate(cfgs):
            ca = a.shape[0]                         # rows present (<= cin_p)
            if ca < cin_p:
                # zero channel-padding rows (only the first block can need this)
                slab_ref[...] = jnp.zeros_like(slab_ref)

            # --- im2col slab: rows [t*cin_p, t*cin_p + ca) <- tap t of activation
            for t, (d, shift_amt, mask) in enumerate(taps):
                piece = a if d == 0 else pltpu.roll(a, shift_amt, axis=1)
                if mask is not None:
                    piece = jnp.where(mask, piece, 0.0)
                slab_ref[pl.ds(t * cin_p, ca), :] = piece

            slab = slab_ref[...] if kdim == k_max else slab_ref[pl.ds(0, kdim), :]

            # --- one bf16 MXU matmul per conv: (Cout_p, K) x (K, S) -> (Cout_p, S)
            acc = jnp.dot(w_refs[i][...], slab.astype(jnp.bfloat16),
                          preferred_element_type=jnp.float32)

            # --- InstanceNorm2d (biased var, single-pass stats) + affine, f32
            inv_s = 1.0 / float(s)
            mean = jnp.sum(acc, axis=1, keepdims=True) * inv_s
            var = jnp.maximum(
                jnp.sum(acc * acc, axis=1, keepdims=True) * inv_s - mean * mean, 0.0)
            scale = g_refs[i][...] * lax.rsqrt(var + EPS)
            shift = b_refs[i][...] - mean * scale
            y = acc * scale + shift

            # --- LeakyReLU
            a = jnp.where(y >= 0, y, NEG_SLOPE * y)  # (Cout_p, S)

        out = a if cout_last == cfgs[-1][3] else a[:cout_last, :]
        o_ref[0] = out.astype(o_ref.dtype)

    return kernel


def _pack_weight(w, cin_pad, cout_pad):
    """(Cout, Cin, KH, KW) torch-layout weight -> (Cout_pad, KH*KW*Cin_pad) bf16,
    row order matching the in-kernel slab: row = (kh*KW + kw)*Cin_pad + ci."""
    cout, cin, kh, kw = w.shape
    wt = jnp.transpose(w, (2, 3, 1, 0)).astype(jnp.float32)          # (kh, kw, cin, cout)
    wt = jnp.pad(wt, ((0, 0), (0, 0), (0, cin_pad - cin), (0, 0)))
    wm = wt.reshape(kh * kw * cin_pad, cout)
    wm = jnp.pad(wm, ((0, 0), (0, cout_pad - cout)))
    return jnp.transpose(wm).astype(jnp.bfloat16)                    # (cout_pad, K)


def stacked_conv_blocks(x_nchw, params, initial_stride=1):
    """StackedConvBlocks.forward. x: (N, C, H, W) f32. params: [(w, gamma, beta)]
    with w in PyTorch (Cout, Cin, 3, 3) layout. Returns (N, Cout_last, H, W)."""
    # TODO(synk): initial_stride > 1 (strided first conv) is not implemented in the kernel.
    assert initial_stride == 1, "only initial_stride == 1 is implemented"
    # TODO(synk): for large images (e.g. v7x 64 MiB VMEM) add an H-strip grid axis
    #             with two-pass InstanceNorm statistics; whole-image blocks are fine here.
    n, cin0, h, w_sp = x_nchw.shape
    s = h * w_sp

    cfgs = []
    cprev = cin0
    for (wgt, _, _) in params:
        cout, cin_w, kh, kw = wgt.shape
        assert cin_w == cprev and kh == 3 and kw == 3, "3x3 convs with matching channels only"
        cin_p = _round_up(cprev, 8)
        cout_p = _round_up(cout, 8)
        cfgs.append((cprev, cin_p, cout, cout_p, kh * kw * cin_p))
        cprev = cout
    cout_last = cfgs[-1][2]
    k_max = max(c[4] for c in cfgs)

    # operands: x (as (N, C, H*W) -- a free reshape of NCHW), then per block
    # packed bf16 weights and padded f32 gamma/beta.
    operands = [x_nchw.reshape(n, cin0, s)]
    in_specs = [pl.BlockSpec((1, cin0, s), lambda b: (b, 0, 0))]
    for (wgt, g, bta), (_cin_r, cin_p, cout_r, cout_p, kdim) in zip(params, cfgs):
        operands.append(_pack_weight(wgt, cin_p, cout_p))
        operands.append(jnp.pad(g.astype(jnp.float32), (0, cout_p - cout_r)).reshape(cout_p, 1))
        operands.append(jnp.pad(bta.astype(jnp.float32), (0, cout_p - cout_r)).reshape(cout_p, 1))
        in_specs.append(pl.BlockSpec((cout_p, kdim), lambda b: (0, 0)))
        in_specs.append(pl.BlockSpec((cout_p, 1), lambda b: (0, 0)))
        in_specs.append(pl.BlockSpec((cout_p, 1), lambda b: (0, 0)))

    # rough VMEM budget (double-buffered in/out blocks + params + slab scratch)
    need = 2 * cin0 * s * 4 + 2 * cout_last * s * 4 + k_max * s * 4
    for (_, _, _, cout_p, kdim) in cfgs:
        need += 2 * (cout_p * kdim * 2 + 2 * cout_p * 4)
    vmem_limit = int(min(max(4 * need, 16 * 2 ** 20), 64 * 2 ** 20))

    flops = sum(2 * n * s * kdim * cout_p for (_, _, _, cout_p, kdim) in cfgs)
    transcendentals = n * sum(cout_p for (_, _, _, cout_p, _) in cfgs)
    bytes_accessed = (n * cin0 * s + n * cout_last * s) * 4 + sum(
        cout_p * kdim * 2 + 2 * cout_p * 4 for (_, _, _, cout_p, kdim) in cfgs)

    kernel = _make_kernel(tuple(cfgs), s, h, w_sp, cout_last, _roll_shift_sign())

    out_flat = pl.pallas_call(
        kernel,
        out_shape=jax.ShapeDtypeStruct((n, cout_last, s), x_nchw.dtype),
        grid=(n,),
        in_specs=in_specs,
        out_specs=pl.BlockSpec((1, cout_last, s), lambda b: (b, 0, 0)),
        scratch_shapes=[pltpu.VMEM((k_max, s), jnp.float32)],
        compiler_params=pltpu.CompilerParams(
            dimension_semantics=("parallel",),
            vmem_limit_bytes=vmem_limit),
        cost_estimate=pl.CostEstimate(flops=flops,
                                      transcendentals=transcendentals,
                                      bytes_accessed=bytes_accessed),
    )(*operands)
    return out_flat.reshape(n, cout_last, h, w_sp)


# ---------------- pure-JAX reference (correctness check only) ----------------
def _ref_block(x, wgt, gamma, beta):
    # conv inputs in bf16 (same precision choice as the kernel's MXU path),
    # accumulation / InstanceNorm / LeakyReLU in f32.
    y = lax.conv_general_dilated(
        x.astype(jnp.bfloat16), wgt.astype(jnp.bfloat16),
        window_strides=(1, 1), padding=((1, 1), (1, 1)),
        dimension_numbers=("NCHW", "OIHW", "NCHW"),
        preferred_element_type=jnp.float32)
    mean = jnp.mean(y, axis=(2, 3), keepdims=True)
    var = jnp.mean((y - mean) ** 2, axis=(2, 3), keepdims=True)
    yn = (y - mean) * lax.rsqrt(var + EPS)
    yn = yn * gamma.reshape(1, -1, 1, 1) + beta.reshape(1, -1, 1, 1)
    return jnp.where(yn >= 0, yn, NEG_SLOPE * yn)


def stacked_conv_blocks_ref(x_nchw, params, initial_stride=1):
    assert initial_stride == 1
    x = x_nchw
    for (wgt, g, bta) in params:
        x = _ref_block(x, wgt, g, bta)
    return x


if __name__ == "__main__":
    # StackedConvBlocks(num_convs=2, nn.Conv2d, input_channels=4, output_channels=[8, 8],
    #                   kernel_size=3, initial_stride=1, conv_bias=False,
    #                   norm_op=nn.InstanceNorm2d(affine=True), nonlin=nn.LeakyReLU(0.01))
    N, CIN, H, W = 2, 4, 16, 16
    K = 3
    out_channels = [8, 8]

    key = jax.random.PRNGKey(0)
    keys = jax.random.split(key, 1 + 3 * len(out_channels))
    x_nchw = jax.random.normal(keys[0], (N, CIN, H, W), jnp.float32)

    params = []
    cprev = CIN
    for i, cout in enumerate(out_channels):
        kw_, kg_, kb_ = keys[1 + 3 * i], keys[2 + 3 * i], keys[3 + 3 * i]
        fan_in = cprev * K * K
        # weights in PyTorch layout (Cout, Cin, KH, KW)
        wgt = jax.random.normal(kw_, (cout, cprev, K, K), jnp.float32) / jnp.sqrt(fan_in)
        gamma = 1.0 + 0.1 * jax.random.normal(kg_, (cout,), jnp.float32)
        beta = 0.1 * jax.random.normal(kb_, (cout,), jnp.float32)
        params.append((wgt, gamma, beta))
        cprev = cout

    out = stacked_conv_blocks(x_nchw, params, initial_stride=1)
    out = jax.block_until_ready(out)

    ref = stacked_conv_blocks_ref(x_nchw, params, initial_stride=1)
    assert out.shape == (N, out_channels[-1], H, W), out.shape
    err = float(jnp.max(jnp.abs(out - ref)))
    assert err < 2e-2, f"max abs err vs reference: {err}"

    print("KERNEL_OK")
</pallas_src>

<mosaic_0001>
module attributes {stable_mosaic.version = 11 : i64} {
  func.func @_probe_roll_kernel(%arg0: memref<8x128xi32, #tpu.memory_space<vmem>>, %arg1: memref<8x128xi32, #tpu.memory_space<vmem>>) attributes {dimension_semantics = [], scalar_prefetch = 0 : i64, scratch_operands = 0 : i64, tpu.core_type = #tpu.core_type<tc>} {
    %c0 = arith.constant 0 : index
    %c0_0 = arith.constant 0 : index
    %0 = vector.load %arg0[%c0, %c0_0] : memref<8x128xi32, #tpu.memory_space<vmem>>, vector<8x128xi32>
    %c1_i32 = arith.constant 1 : i32
    %1 = tpu.dynamic_rotate %0 by %c1_i32 dim 1 : vector<8x128xi32>, i32 -> vector<8x128xi32>
    %c0_1 = arith.constant 0 : index
    %c0_2 = arith.constant 0 : index
    %2 = vector.load %arg1[%c0_1, %c0_2] : memref<8x128xi32, #tpu.memory_space<vmem>>, vector<8x128xi32>
    tpu.vector_store %arg1[%c0_1, %c0_2], %1 {strides = array<i32>} : memref<8x128xi32, #tpu.memory_space<vmem>>, vector<8x128xi32>,
    return
  }
}

</mosaic_0001>

<bundles_post_ra>
// kernel: tpu_custom_call.1
= control target key start
LH: loop header
LB: loop body
LE: loop exit
PB: predicated region body
PF: predicated region fallthrough
CT: control target
= control target key end

     0   :  { %6 = vsyncpa [#allocation3], 0  ;;  %s106_s0 = inlined_call_operand.hbm [shape: s32[8,128], index: 0, kind: input, shape index: {}]   ;;  %s107_s1 = inlined_call_operand.hbm [shape: s32[8,128], index: 1, kind: output, shape index: {}]  }
   0x1   :  { %7 = vsyncpa [#allocation4], 0  ;;  %s87_s6 = smov [#allocation2]  }
   0x2   :  { %s14_s7 = sshll.u32 %s87_s6, 4  ;;  %s15_s7 = int_to_ptr.vmem [resolvable:$true] %s14_s7 }
   0x3   :  { %s51_s8 = scalar_lea.vmem %s15_s7, 128  ;;  %p56_p1 = scmp.lt.s32.totalorder %s15_s7, %s15_s7 }
   0x4   :  { %p52_p0 = scmp.ne.s32.totalorder %s15_s7, %s51_s8  ;;  %p57_p2 = scmp.lt.s32.totalorder %s51_s8, %s51_s8 }
   0x6   :  { %p58_p3 = por %p57_p2, %p56_p1 }
   0x8   :  { %p59_p4 = pnand %p58_p3, %p52_p0 }
   0xa   :  { %62 = shalt.err (!%p59_p4)
}
   0xb   :  { %17 = dma.hbm_to_vmem [thread:$0]  %s106_s0, 128, %s15_s7, [#allocation3]  }
   0xc   :  { %83 = dma.done.wait [#allocation3], 128  }
   0xd   :  { %84 = vsyncadd [#allocation3], 4294967168  ;;  %v21_v0 = vld [vmem:[#allocation2] sm:$0xff]  ;;  %s88_s11 = smov 1   ;;  %s89_s12 = smov [#allocation5]  }
   0xe   :  { %22 = vrot.lane.b32.xlu0 %v21_v0, %s88_s11  ;;  %s31_s13 = sshll.u32 %s89_s12, 4  ;;  %s32_s13 = int_to_ptr.vmem [resolvable:$true] %s31_s13 }
   0xf   :  { %s63_s14 = scalar_lea.vmem %s32_s13, 128  ;;  %p68_p6 = scmp.lt.s32.totalorder %s32_s13, %s32_s13 }
  0x10   :  { %p64_p5 = scmp.ne.s32.totalorder %s32_s13, %s63_s14  ;;  %p69_p7 = scmp.lt.s32.totalorder %s63_s14, %s63_s14 }
  0x12   :  { %p70_p8 = por %p69_p7, %p68_p6 }
  0x14   :  { %p71_p9 = pnand %p70_p8, %p64_p5 }
  0x80   :  { %v23_v1 = vpop.permute.xlu0 %22 }
  0x81   :  { %24 = vst [vmem:[#allocation5] sm:$0xff] %v23_v1 }
  0x82   :  { %74 = shalt.err (!%p71_p9)
}
  0x83   :  { %34 = dma.vmem_to_hbm [thread:$0]  %s32_s13, 128, %s107_s1, [#allocation4]  }
  0x84   :  { %85 = dma.done.wait [#allocation4], 128  }
  0x85   :  { %86 = vsyncadd [#allocation4], 4294967168 }
  0x86   :  { %38 = vsyncpa [#allocation3], 1 }
  0x87   :  { %39 = vsyncpa [#allocation4], 1 }

</bundles_post_ra>
